<compile_context>
chip_gen: v5e
topology: v5e:2x2
jax: 0.10.0
libtpu: 0.0.40
codegen_flags: <defaults>
</compile_context>

<pallas_src>
import functools
import math

import jax
import jax.numpy as jnp
from jax import lax
from jax.experimental import pallas as pl
from jax.experimental.pallas import tpu as pltpu

LANES = 128
TARGET_TILE_ROWS = 4096   # 2 MiB per f32 input tile -> near the HBM roofline
ACC_ROWS = 64             # accumulator height: 8 independent vreg-add chains


def _int_pow(x, p):
    """x**p as VPU multiplies (exponentiation by squaring) for small integer p."""
    p_f = float(p)
    if p_f.is_integer() and 0 <= int(p_f) <= 16:
        n = int(p_f)
        if n == 0:
            return jnp.ones_like(x)
        result = None
        base = x
        while n:
            if n & 1:
                result = base if result is None else result * base
            n >>= 1
            if n:
                base = base * base
        return result
    # Non-integer exponents fall back to the transcendental path.
    return jnp.power(x, p)


def _row_align(dtype):
    # Sublane packing: f32 -> 8 rows, bf16 -> 16 rows, 8-bit -> 32 rows.
    return max(8, 32 // jnp.dtype(dtype).itemsize)


def _detect_num_tensorcores():
    """TensorCores per chip: 2 on v7x, 1 on v5e/v6e.  Conservative default 1."""
    try:
        info = pltpu.get_tpu_info()
        for attr in ("num_tensorcores", "tensorcores_per_chip", "num_tensor_cores"):
            v = getattr(info, attr, None)
            if isinstance(v, int) and 1 <= v <= 4:
                return v
    except Exception:
        pass
    try:
        kind = (getattr(jax.devices()[0], "device_kind", "") or "").lower()
        if "v7" in kind:
            return 2
    except Exception:
        pass
    return 1


def _focal_kernel(pred_ref, gt_ref, loss_out, npos_out, loss_acc, npos_acc, *,
                  alpha, beta, tile_rows, acc_rows, tiles_per_core, rows_valid,
                  need_mask):
    c = pl.program_id(0)   # core axis (CORE_PARALLEL when >1 TensorCore)
    j = pl.program_id(1)   # "arbitrary" reduction axis over row tiles

    @pl.when(j == 0)
    def _():
        loss_acc[...] = jnp.zeros_like(loss_acc)
        npos_acc[...] = jnp.zeros_like(npos_acc)

    def accumulate(row_bound):
        pred = pred_ref[...].astype(jnp.float32)
        gt = gt_ref[...].astype(jnp.float32)
        if row_bound is not None:
            # Boundary tile only: sanitize the garbage rows *before* the logs.
            # pred = 0, gt = 0 contributes exactly 0 to both the loss and the
            # positive count under the simplified formulas below.
            row_ids = lax.broadcasted_iota(jnp.int32, pred.shape, 0)
            valid = row_ids < row_bound
            pred = jnp.where(valid, pred, 0.0)
            gt = jnp.where(valid, gt, 0.0)

        pos_mask = gt == 1.0
        pos_cnt = pos_mask.astype(jnp.float32)
        # Positive branch: select instead of cast+multiply.
        pos_contrib = jnp.where(
            pos_mask, jnp.log(pred) * _int_pow(1.0 - pred, alpha), 0.0)
        # Negative branch: (1-gt)^beta is exactly 0 at gt == 1, so the explicit
        # (gt < 1) indicator of the reference is redundant for gt in [0, 1].
        neg_contrib = (jnp.log(1.0 - pred) * _int_pow(pred, alpha)
                       * _int_pow(1.0 - gt, beta))

        # Pure-VPU accumulation with 8 independent add chains per accumulator.
        contrib = (pos_contrib + neg_contrib).reshape(
            tile_rows // acc_rows, acc_rows, LANES)
        counts = pos_cnt.reshape(tile_rows // acc_rows, acc_rows, LANES)
        loss_acc[...] += contrib.sum(axis=0)
        npos_acc[...] += counts.sum(axis=0)

    if need_mask:
        # Logical (unclamped) row offset of this grid step; the input index_map
        # clamps, but skipping/masking uses the logical position.
        row_start = (c * tiles_per_core + j) * tile_rows

        @pl.when(row_start + tile_rows <= rows_valid)
        def _():
            accumulate(None)                      # interior tile: no mask cost

        @pl.when(jnp.logical_and(row_start < rows_valid,
                                 row_start + tile_rows > rows_valid))
        def _():
            accumulate(rows_valid - row_start)    # boundary tile: row mask
        # row_start >= rows_valid: clamped duplicate tile -> all compute skipped.
    else:
        accumulate(None)

    @pl.when(j == pl.num_programs(1) - 1)
    def _():
        # Fold (acc_rows, 128) partials to a lane-dense (8, 128) output block.
        loss_out[...] = loss_acc[...].reshape(acc_rows // 8, 8, LANES).sum(axis=0)
        npos_out[...] = npos_acc[...].reshape(acc_rows // 8, 8, LANES).sum(axis=0)


def focal_loss_pallas(pred, gt, alpha=2.0, beta=4.0):
    """Pallas implementation of FocalLoss.forward(out, target).

    pred, gt: (B, C, H, W) float heatmaps. Returns a scalar float32 loss.
    """
    assert pred.shape == gt.shape
    n = int(pred.size)

    pred_f = pred.reshape(-1)
    gt_f = gt.reshape(-1)

    rows = n // LANES
    tail = n - rows * LANES

    total = jnp.float32(0.0)
    num_pos = jnp.float32(0.0)

    if tail:
        # <=127-element tail folded on host (negligible work); avoids padding /
        # copying the whole tensor just for lane alignment.
        tp = pred_f[rows * LANES:].astype(jnp.float32)
        tg = gt_f[rows * LANES:].astype(jnp.float32)
        pos_mask = tg == 1.0
        pos_l = jnp.where(pos_mask, jnp.log(tp) * _int_pow(1.0 - tp, alpha), 0.0)
        neg_l = (jnp.log(1.0 - tp) * _int_pow(tp, alpha)
                 * _int_pow(1.0 - tg, beta) * (tg < 1.0).astype(jnp.float32))
        total = total + jnp.sum(pos_l + neg_l)
        num_pos = num_pos + jnp.sum(pos_mask.astype(jnp.float32))

    if rows > 0:
        if tail:
            pred2d = pred_f[:rows * LANES].reshape(rows, LANES)
            gt2d = gt_f[:rows * LANES].reshape(rows, LANES)
        else:
            pred2d = pred_f.reshape(rows, LANES)   # free: no copy
            gt2d = gt_f.reshape(rows, LANES)

        align = max(_row_align(pred.dtype), _row_align(gt.dtype))
        tile_rows = min(TARGET_TILE_ROWS, max(align, (rows // align) * align))
        n_tiles = -(-rows // tile_rows)

        num_cores = max(1, min(_detect_num_tensorcores(), n_tiles))
        tiles_per_core = -(-n_tiles // num_cores)
        need_mask = num_cores * tiles_per_core * tile_rows != rows
        acc_rows = math.gcd(tile_rows, ACC_ROWS)   # multiple of 8, divides tile_rows

        def in_index_map(c, j):
            # Clamp so every issued block is in bounds; fully-out-of-range grid
            # steps skip their compute inside the kernel.
            return (jnp.minimum(c * tiles_per_core + j, n_tiles - 1), 0)

        tile_spec = pl.BlockSpec((tile_rows, LANES), in_index_map)
        out_spec = pl.BlockSpec((8, LANES), lambda c, j: (c, 0))

        kernel = functools.partial(
            _focal_kernel, alpha=alpha, beta=beta, tile_rows=tile_rows,
            acc_rows=acc_rows, tiles_per_core=tiles_per_core, rows_valid=rows,
            need_mask=need_mask)

        dim_sems = ((pltpu.CORE_PARALLEL if num_cores > 1 else pltpu.ARBITRARY),
                    pltpu.ARBITRARY)

        in_bytes = rows * LANES * (jnp.dtype(pred.dtype).itemsize
                                   + jnp.dtype(gt.dtype).itemsize)
        cost = pl.CostEstimate(
            flops=16 * rows * LANES,
            transcendentals=2 * rows * LANES,
            bytes_accessed=in_bytes + 2 * num_cores * 8 * LANES * 4)

        loss_part, npos_part = pl.pallas_call(
            kernel,
            out_shape=(jax.ShapeDtypeStruct((num_cores * 8, LANES), jnp.float32),
                       jax.ShapeDtypeStruct((num_cores * 8, LANES), jnp.float32)),
            grid_spec=pltpu.PrefetchScalarGridSpec(
                num_scalar_prefetch=0,
                grid=(num_cores, tiles_per_core),
                in_specs=[tile_spec, tile_spec],
                out_specs=[out_spec, out_spec],
                scratch_shapes=[pltpu.VMEM((acc_rows, LANES), jnp.float32),
                                pltpu.VMEM((acc_rows, LANES), jnp.float32)]),
            compiler_params=pltpu.CompilerParams(
                dimension_semantics=dim_sems,
                vmem_limit_bytes=32 * 1024 * 1024),
            cost_estimate=cost,
        )(pred2d, gt2d)

        total = total + jnp.sum(loss_part)
        num_pos = num_pos + jnp.sum(npos_part)

    # pos_loss is identically 0 when num_pos == 0, so this reproduces both
    # branches of the PyTorch code: -neg_loss  /  -(pos+neg)/num_pos.
    return -total / jnp.maximum(num_pos, 1.0)


def _focal_loss_ref(pred, gt, alpha=2.0, beta=4.0):
    """Pure-JAX reference mirroring the PyTorch _neg_loss."""
    pred = pred.astype(jnp.float32)
    gt = gt.astype(jnp.float32)
    pos_inds = (gt == 1.0).astype(jnp.float32)
    neg_inds = (gt < 1.0).astype(jnp.float32)
    neg_weights = jnp.power(1.0 - gt, beta)
    pos_loss = jnp.log(pred) * jnp.power(1.0 - pred, alpha) * pos_inds
    neg_loss = jnp.log(1.0 - pred) * jnp.power(pred, alpha) * neg_weights * neg_inds
    num_pos = pos_inds.sum()
    pos_loss = pos_loss.sum()
    neg_loss = neg_loss.sum()
    return jnp.where(
        num_pos == 0.0,
        -neg_loss,
        -(pos_loss + neg_loss) / jnp.where(num_pos == 0.0, 1.0, num_pos),
    )


if __name__ == "__main__":
    key = jax.random.PRNGKey(0)
    k_pred, k_gt, k_pos = jax.random.split(key, 3)

    B, C, H, W = 2, 4, 16, 16  # NCHW, matching the PyTorch module convention

    # pred: sigmoid-like scores strictly in (0, 1)
    pred = jax.random.uniform(
        k_pred, (B, C, H, W), jnp.float32, minval=1e-4, maxval=1.0 - 1e-4
    )
    # gt: Gaussian-ish heatmap in [0, 1) with a few exact 1.0 "positive" peaks
    gt = jax.random.uniform(k_gt, (B, C, H, W), jnp.float32, minval=0.0, maxval=0.95)
    peak_mask = jax.random.uniform(k_pos, (B, C, H, W)) > 0.98
    gt = jnp.where(peak_mask, 1.0, gt)

    loss = focal_loss_pallas(pred, gt, alpha=2.0, beta=4.0)
    loss = jax.block_until_ready(loss)

    ref = _focal_loss_ref(pred, gt, alpha=2.0, beta=4.0)
    assert jnp.allclose(loss, ref, rtol=1e-4, atol=1e-4), (loss, ref)

    print("KERNEL_OK")
</pallas_src>

<mosaic_0001>
module attributes {stable_mosaic.version = 11 : i64} {
  func.func @_focal_kernel(%arg0: i32, %arg1: i32, %arg2: memref<16x128xf32, #tpu.memory_space<vmem>>, %arg3: memref<16x128xf32, #tpu.memory_space<vmem>>, %arg4: memref<8x128xf32, #tpu.memory_space<vmem>>, %arg5: memref<8x128xf32, #tpu.memory_space<vmem>>, %arg6: memref<16x128xf32, #tpu.memory_space<vmem>>, %arg7: memref<16x128xf32, #tpu.memory_space<vmem>>) attributes {dimension_semantics = [#tpu.dimension_semantics<arbitrary>, #tpu.dimension_semantics<arbitrary>], iteration_bounds = array<i64: 1, 1>, scalar_prefetch = 0 : i64, scratch_operands = 2 : i64, tpu.core_type = #tpu.core_type<tc>, window_params = [{transform_indices = @transform_0, window_bounds = array<i64: 16, 128>}, {transform_indices = @transform_1, window_bounds = array<i64: 16, 128>}, {transform_indices = @transform_2, window_bounds = array<i64: 8, 128>}, {transform_indices = @transform_3, window_bounds = array<i64: 8, 128>}]} {
    %c0_i32 = arith.constant 0 : i32
    %0 = arith.cmpi eq, %arg1, %c0_i32 : i32
    %1 = arith.extui %0 : i1 to i32
    %c0_i32_0 = arith.constant 0 : i32
    %2 = arith.cmpi ne, %1, %c0_i32_0 : i32
    scf.if %2 {
      %cst_20 = arith.constant 0.000000e+00 : f32
      %40 = vector.broadcast %cst_20 : f32 to vector<16x128xf32>
      %c0_21 = arith.constant 0 : index
      %c0_22 = arith.constant 0 : index
      %41 = vector.load %arg6[%c0_21, %c0_22] : memref<16x128xf32, #tpu.memory_space<vmem>>, vector<16x128xf32>
      tpu.vector_store %arg6[%c0_21, %c0_22], %40 {strides = array<i32>} : memref<16x128xf32, #tpu.memory_space<vmem>>, vector<16x128xf32>,
      %cst_23 = arith.constant 0.000000e+00 : f32
      %42 = vector.broadcast %cst_23 : f32 to vector<16x128xf32>
      %c0_24 = arith.constant 0 : index
      %c0_25 = arith.constant 0 : index
      %43 = vector.load %arg7[%c0_24, %c0_25] : memref<16x128xf32, #tpu.memory_space<vmem>>, vector<16x128xf32>
      tpu.vector_store %arg7[%c0_24, %c0_25], %42 {strides = array<i32>} : memref<16x128xf32, #tpu.memory_space<vmem>>, vector<16x128xf32>,
    } else {
    }
    %c0 = arith.constant 0 : index
    %c0_1 = arith.constant 0 : index
    %3 = vector.load %arg2[%c0, %c0_1] : memref<16x128xf32, #tpu.memory_space<vmem>>, vector<16x128xf32>
    %c0_2 = arith.constant 0 : index
    %c0_3 = arith.constant 0 : index
    %4 = vector.load %arg3[%c0_2, %c0_3] : memref<16x128xf32, #tpu.memory_space<vmem>>, vector<16x128xf32>
    %cst = arith.constant 1.000000e+00 : f32
    %5 = vector.broadcast %cst : f32 to vector<16x128xf32>
    %6 = arith.cmpf oeq, %4, %5 : vector<16x128xf32>
    %7 = arith.extui %6 : vector<16x128xi1> to vector<16x128xi32>
    %8 = arith.sitofp %7 : vector<16x128xi32> to vector<16x128xf32>
    %9 = math.log %3 : vector<16x128xf32>
    %cst_4 = arith.constant 1.000000e+00 : f32
    %10 = vector.broadcast %cst_4 : f32 to vector<16x128xf32>
    %11 = arith.subf %10, %3 : vector<16x128xf32>
    %12 = arith.mulf %11, %11 : vector<16x128xf32>
    %13 = arith.mulf %9, %12 : vector<16x128xf32>
    %cst_5 = arith.constant 0.000000e+00 : f32
    %14 = vector.broadcast %cst_5 : f32 to vector<16x128xf32>
    %15 = arith.select %6, %13, %14 : vector<16x128xi1>, vector<16x128xf32>
    %cst_6 = arith.constant 1.000000e+00 : f32
    %16 = vector.broadcast %cst_6 : f32 to vector<16x128xf32>
    %17 = arith.subf %16, %3 : vector<16x128xf32>
    %18 = math.log %17 : vector<16x128xf32>
    %19 = arith.mulf %3, %3 : vector<16x128xf32>
    %20 = arith.mulf %18, %19 : vector<16x128xf32>
    %cst_7 = arith.constant 1.000000e+00 : f32
    %21 = vector.broadcast %cst_7 : f32 to vector<16x128xf32>
    %22 = arith.subf %21, %4 : vector<16x128xf32>
    %23 = arith.mulf %22, %22 : vector<16x128xf32>
    %24 = arith.mulf %23, %23 : vector<16x128xf32>
    %25 = arith.mulf %20, %24 : vector<16x128xf32>
    %26 = arith.addf %15, %25 : vector<16x128xf32>
    %27 = vector.shape_cast %26 : vector<16x128xf32> to vector<1x16x128xf32>
    %28 = vector.shape_cast %8 : vector<16x128xf32> to vector<1x16x128xf32>
    %c0_8 = arith.constant 0 : index
    %c0_9 = arith.constant 0 : index
    %29 = vector.load %arg6[%c0_8, %c0_9] : memref<16x128xf32, #tpu.memory_space<vmem>>, vector<16x128xf32>
    %cst_10 = arith.constant dense<0.000000e+00> : vector<16x128xf32>
    %30 = vector.multi_reduction <add>, %27, %cst_10 [0] : vector<1x16x128xf32> to vector<16x128xf32>
    %31 = arith.addf %29, %30 : vector<16x128xf32>
    %c0_11 = arith.constant 0 : index
    %c0_12 = arith.constant 0 : index
    %32 = vector.load %arg6[%c0_11, %c0_12] : memref<16x128xf32, #tpu.memory_space<vmem>>, vector<16x128xf32>
    tpu.vector_store %arg6[%c0_11, %c0_12], %31 {strides = array<i32>} : memref<16x128xf32, #tpu.memory_space<vmem>>, vector<16x128xf32>,
    %c0_13 = arith.constant 0 : index
    %c0_14 = arith.constant 0 : index
    %33 = vector.load %arg7[%c0_13, %c0_14] : memref<16x128xf32, #tpu.memory_space<vmem>>, vector<16x128xf32>
    %cst_15 = arith.constant dense<0.000000e+00> : vector<16x128xf32>
    %34 = vector.multi_reduction <add>, %28, %cst_15 [0] : vector<1x16x128xf32> to vector<16x128xf32>
    %35 = arith.addf %33, %34 : vector<16x128xf32>
    %c0_16 = arith.constant 0 : index
    %c0_17 = arith.constant 0 : index
    %36 = vector.load %arg7[%c0_16, %c0_17] : memref<16x128xf32, #tpu.memory_space<vmem>>, vector<16x128xf32>
    tpu.vector_store %arg7[%c0_16, %c0_17], %35 {strides = array<i32>} : memref<16x128xf32, #tpu.memory_space<vmem>>, vector<16x128xf32>,
    %c0_i32_18 = arith.constant 0 : i32
    %37 = arith.cmpi eq, %arg1, %c0_i32_18 : i32
    %38 = arith.extui %37 : i1 to i32
    %c0_i32_19 = arith.constant 0 : i32
    %39 = arith.cmpi ne, %38, %c0_i32_19 : i32
    scf.if %39 {
      %c0_20 = arith.constant 0 : index
      %c0_21 = arith.constant 0 : index
      %40 = vector.load %arg6[%c0_20, %c0_21] : memref<16x128xf32, #tpu.memory_space<vmem>>, vector<16x128xf32>
      %41 = vector.shape_cast %40 : vector<16x128xf32> to vector<2x8x128xf32>
      %cst_22 = arith.constant dense<0.000000e+00> : vector<8x128xf32>
      %42 = vector.multi_reduction <add>, %41, %cst_22 [0] : vector<2x8x128xf32> to vector<8x128xf32>
      %c0_23 = arith.constant 0 : index
      %c0_24 = arith.constant 0 : index
      %43 = vector.load %arg4[%c0_23, %c0_24] : memref<8x128xf32, #tpu.memory_space<vmem>>, vector<8x128xf32>
      tpu.vector_store %arg4[%c0_23, %c0_24], %42 {strides = array<i32>} : memref<8x128xf32, #tpu.memory_space<vmem>>, vector<8x128xf32>,
      %c0_25 = arith.constant 0 : index
      %c0_26 = arith.constant 0 : index
      %44 = vector.load %arg7[%c0_25, %c0_26] : memref<16x128xf32, #tpu.memory_space<vmem>>, vector<16x128xf32>
      %45 = vector.shape_cast %44 : vector<16x128xf32> to vector<2x8x128xf32>
      %cst_27 = arith.constant dense<0.000000e+00> : vector<8x128xf32>
      %46 = vector.multi_reduction <add>, %45, %cst_27 [0] : vector<2x8x128xf32> to vector<8x128xf32>
      %c0_28 = arith.constant 0 : index
      %c0_29 = arith.constant 0 : index
      %47 = vector.load %arg5[%c0_28, %c0_29] : memref<8x128xf32, #tpu.memory_space<vmem>>, vector<8x128xf32>
      tpu.vector_store %arg5[%c0_28, %c0_29], %46 {strides = array<i32>} : memref<8x128xf32, #tpu.memory_space<vmem>>, vector<8x128xf32>,
    } else {
    }
    return
  }
  func.func @transform_0(%arg0: i32, %arg1: i32) -> (i32, i32) {
    %c1_i32 = arith.constant 1 : i32
    %0 = arith.muli %arg0, %c1_i32 : i32
    %1 = arith.addi %0, %arg1 : i32
    %c0_i32 = arith.constant 0 : i32
    %2 = arith.minsi %1, %c0_i32 : i32
    %c0_i32_0 = arith.constant 0 : i32
    %c0_i32_1 = arith.constant 0 : i32
    return %2, %c0_i32_0 : i32, i32
  }
  func.func @transform_1(%arg0: i32, %arg1: i32) -> (i32, i32) {
    %c1_i32 = arith.constant 1 : i32
    %0 = arith.muli %arg0, %c1_i32 : i32
    %1 = arith.addi %0, %arg1 : i32
    %c0_i32 = arith.constant 0 : i32
    %2 = arith.minsi %1, %c0_i32 : i32
    %c0_i32_0 = arith.constant 0 : i32
    %c0_i32_1 = arith.constant 0 : i32
    return %2, %c0_i32_0 : i32, i32
  }
  func.func @transform_2(%arg0: i32, %arg1: i32) -> (i32, i32) {
    %c0_i32 = arith.constant 0 : i32
    %c0_i32_0 = arith.constant 0 : i32
    return %arg0, %c0_i32 : i32, i32
  }
  func.func @transform_3(%arg0: i32, %arg1: i32) -> (i32, i32) {
    %c0_i32 = arith.constant 0 : i32
    %c0_i32_0 = arith.constant 0 : i32
    return %arg0, %c0_i32 : i32, i32
  }
}

</mosaic_0001>

<bundles_post_ra>
// kernel: tpu_custom_call.1
= control target key start
LH: loop header
LB: loop body
LE: loop exit
PB: predicated region body
PF: predicated region fallthrough
CT: control target
= control target key end

     0   :  { %9 = vsyncpa [#allocation5], 0  ;;  %s344_s0 = inlined_call_operand.hbm [shape: f32[16,128], index: 0, kind: input, shape index: {}]   ;;  %s345_s1 = inlined_call_operand.hbm [shape: f32[16,128], index: 1, kind: input, shape index: {}]   ;;  %s346_s2 = inlined_call_operand.hbm [shape: f32[8,128], index: 2, kind: output, shape index: {0}]   ;;  %s347_s3 = inlined_call_operand.hbm [shape: f32[8,128], index: 3, kind: output, shape index: {1}]  }
   0x1   :  { %10 = vsyncpa [#allocation8], 0 }
   0x2   :  { %11 = vsyncpa [#allocation6], 0 }
   0x3   :  { %12 = vsyncpa [#allocation11], 0  ;;  %s23_s14 = sshll.u32 %s344_s0, 4  ;;  %s301_s15 = smov [#allocation4]   ;;  %s24_s14 = int_to_ptr.hbm [resolvable:$true] %s23_s14 }
   0x4   :  { %s25_s16 = sshll.u32 %s301_s15, 4  ;;  %s42_s19 = sshll.u32 %s345_s1, 4  ;;  %s26_s16 = int_to_ptr.vmem [resolvable:$true] %s25_s16  ;;  %s43_s19 = int_to_ptr.hbm [resolvable:$true] %s42_s19 }
   0x5   :  { %s302_s20 = smov 128   ;;  %s303_s21 = smov 8  }
   0x6   :  { %31 = dma.hbm_to_vmem [thread:$0]  %s24_s14, 256, %s26_s16, [#allocation5], %s302_s20, %s302_s20, %s303_s21  }
   0x7   :  { %s304_s22 = smov [#allocation7]  }
   0x8   :  { %s44_s23 = sshll.u32 %s304_s22, 4  ;;  %s45_s23 = int_to_ptr.vmem [resolvable:$true] %s44_s23 }
   0x9   :  { %50 = dma.hbm_to_vmem [thread:$0]  %s43_s19, 256, %s45_s23, [#allocation8], %s302_s20, %s302_s20, %s303_s21  }
   0xa   :  { %293 = dma.done.wait [#allocation5], 256  }
   0xb   :  { %294 = vsyncadd [#allocation5], 4294967040 }
   0xc   :  { %295 = dma.done.wait [#allocation8], 256  }
   0xd   :  { %296 = vsyncadd [#allocation8], 4294967040  ;;  %v75_v0 = vld [vmem:[#allocation4] sm:$0xff]  ;;  %v76_v1 = vld [vmem:[#allocation4 + $0x8] sm:$0xff]  ;;  %s305_s0 = smov [#allocation10]   ;;  %s160_s26 = sshll.u32 %s347_s3, 4  ;;  %s161_s26 = int_to_ptr.hbm [resolvable:$true] %s160_s26 }
   0xe   :  { %v77_v2 = vld [vmem:[#allocation7] sm:$0xff]  ;;  %v78_v3 = vld [vmem:[#allocation7 + $0x8] sm:$0xff]  ;;  %189 = vlog2.f32 %v75_v0  ;;  %v89_v4 = vsub.f32 1.0, %v75_v0  ;;  %v90_v5 = vsub.f32 1.0, %v76_v1  ;;  %s158_s1 = sshll.u32 %s305_s0, 4  ;;  %v306_v8 = vmov 0.0   ;;  %s159_s1 = int_to_ptr.vmem [resolvable:$true] %s158_s1 }
   0xf   :  { %191 = vlog2.f32 %v76_v1  ;;  %vm79_vm0 = vcmp.eq.f32.partialorder %v77_v2, 1.0  ;;  %vm80_vm1 = vcmp.eq.f32.partialorder %v78_v3, 1.0  ;;  %v105_v6 = vsub.f32 1.0, %v77_v2  ;;  %s307_s3 = smov [#allocation9]   ;;  %s149_s30 = sshll.u32 %s346_s2, 4  ;;  %s150_s30 = int_to_ptr.hbm [resolvable:$true] %s149_s30 }
  0x10   :  { %193 = vlog2.f32 %v89_v4  ;;  %v106_v7 = vsub.f32 1.0, %v78_v3  ;;  %v180_v9 = vsel %vm79_vm0, 1.0, %v306_v8  ;;  %v181_v10 = vsel %vm80_vm1, 1.0, %v306_v8  ;;  %s147_s27 = sshll.u32 %s307_s3, 4  ;;  %s148_s27 = int_to_ptr.vmem [resolvable:$true] %s147_s27 }
  0x11   :  { %195 = vlog2.f32 %v90_v5  ;;  %v140_v11 = vadd.f32 %v181_v10, %v180_v9  ;;  %v91_v12 = vmul.f32 %v89_v4, %v89_v4  ;;  %v107_v13 = vmul.f32 %v105_v6, %v105_v6 }
  0x12   :  { %v92_v15 = vmul.f32 %v90_v5, %v90_v5  ;;  %v108_v16 = vmul.f32 %v106_v7, %v106_v7  ;;  %v101_v19 = vmul.f32 %v75_v0, %v75_v0  ;;  %v102_v22 = vmul.f32 %v76_v1, %v76_v1 }
  0x13   :  { %141 = vst [vmem:[#allocation10] sm:$0xff] %v140_v11  ;;  %v109_v26 = vmul.f32 %v107_v13, %v107_v13 }
  0x14   :  { %v190_v14 = vpop.eup %189  ;;  %163 = dma.vmem_to_hbm [thread:$0]  %s159_s1, 128, %s161_s26, [#allocation11]   ;;  %v110_v29 = vmul.f32 %v108_v16, %v108_v16 }
  0x15   :  { %v192_v17 = vpop.eup %191  ;;  %v86_v18 = vmul.f32 0.6931472, %v190_v14 }
  0x16   :  { %v194_v20 = vpop.eup %193  ;;  %v88_v21 = vmul.f32 0.6931472, %v192_v17 }
  0x17   :  { %v196_v23 = vpop.eup %195  ;;  %v93_v24 = vmul.f32 %v91_v12, %v86_v18  ;;  %v98_v25 = vmul.f32 0.6931472, %v194_v20 }
  0x18   :  { %v94_v27 = vmul.f32 %v92_v15, %v88_v21  ;;  %v100_v28 = vmul.f32 0.6931472, %v196_v23 }
  0x19   :  { %v103_v30 = vmul.f32 %v101_v19, %v98_v25  ;;  %v95_v31 = vsel %vm79_vm0, %v93_v24, 0.0 }
  0x1a   :  { %v104_v32 = vmul.f32 %v102_v22, %v100_v28  ;;  %v96_v33 = vsel %vm80_vm1, %v94_v27, 0.0 }
  0x1b   :  { %v111_v34 = vmul.f32 %v109_v26, %v103_v30 }
  0x1c   :  { %v112_v35 = vmul.f32 %v110_v29, %v104_v32 }
  0x1d   :  { %v113_v36 = vadd.f32 %v111_v34, %v95_v31 }
  0x1e   :  { %v114_v37 = vadd.f32 %v112_v35, %v96_v33 }
  0x20   :  { %v136_v38 = vadd.f32 %v114_v37, %v113_v36 }
  0x22   :  { %137 = vst [vmem:[#allocation9] sm:$0xff] %v136_v38 }
  0x23   :  { %152 = dma.vmem_to_hbm [thread:$0]  %s148_s27, 128, %s150_s30, [#allocation6]  }
  0x24   :  { %297 = dma.done.wait [#allocation6], 128  }
  0x25   :  { %298 = vsyncadd [#allocation6], 4294967168 }
  0x26   :  { %299 = dma.done.wait [#allocation11], 128  }
  0x27   :  { %300 = vsyncadd [#allocation11], 4294967168 }
  0x28   :  { %172 = vsyncpa [#allocation5], 1 }
  0x29   :  { %173 = vsyncpa [#allocation8], 1 }
  0x2a   :  { %174 = vsyncpa [#allocation6], 1 }
  0x2b   :  { %175 = vsyncpa [#allocation11], 1 }

</bundles_post_ra>
